<compile_context>
chip_gen: v7x
topology: tpu7x:2x2x1
jax: 0.10.0
libtpu: 0.0.40
codegen_flags: <defaults>
</compile_context>

<pallas_src>
import math
import functools

import jax
import jax.numpy as jnp
from jax.experimental import pallas as pl
from jax.experimental.pallas import tpu as pltpu


def _pcen_kernel(x_ref, vt_ref, alpha_ref, delta_ref, r_ref, dr_ref, o_ref,
                 *, s, eps, blk_t, t_full):
    # x_ref   : (blk_m, T)     band-major layout, full time axis (matmul reduction)
    # vt_ref  : (blk_t, T)     rows [t0 : t0+blk_t] of V^T
    # *_ref   : (1, blk_m)     per-band params, pre-exp'd, tiled over B*C
    # o_ref   : (blk_t, blk_m) time-major, lane-dense-in-M output tile
    xt = x_ref[...].T                                   # (T, blk_m) in-VMEM transpose
    vt = vt_ref[...]                                    # (blk_t, T)

    # smoother^T tile = s * (V^T @ X^T) + (1 - s) * V^T[:, 0] (outer) X^T[0, :]
    sm = s * jnp.dot(vt, xt, preferred_element_type=jnp.float32)
    sm = sm + (1.0 - s) * vt[:, 0:1] * xt[0:1, :]

    # (eps + smoother)^(-alpha): single log instead of log + log1p + divide.
    smooth = jnp.exp(-alpha_ref[...] * jnp.log(eps + sm))

    if blk_t == t_full:
        x_tile = xt                                     # full time block, no slice
    else:
        t0 = pl.multiple_of(pl.program_id(1) * blk_t, blk_t)
        x_tile = jax.lax.dynamic_slice_in_dim(xt, t0, blk_t, axis=0)

    base = x_tile * smooth + delta_ref[...]
    o_ref[...] = base ** r_ref[...] - dr_ref[...]       # delta**r precomputed


def _pick_blk_t(t, cap=256):
    """Largest time tile <= cap that divides T and is sublane-aligned."""
    if t <= cap:
        return t
    start = cap - (cap % 8)
    for cand in range(start, 7, -8):
        if t % cand == 0:
            return cand
    return t


def _pick_blk_m(m, t, cap=512, budget_bytes=12 * 1024 * 1024):
    """Lane-dense (multiple-of-128) M tile; aim for >=2 blocks (v7x 2 TCs)."""
    if m <= 128:
        return m
    blk = min(cap, max(128, (m // 2) // 128 * 128))
    # keep the double-buffered full-time x block inside a modest VMEM budget
    while blk > 128 and 2 * blk * t * 4 > budget_bytes:
        blk -= 128
    return blk


def pcen_forward(x, log_alpha, log_delta, log_r, *, t_val=2.0 ** 8, eps=1e-5):
    """x: (B, C, F, T) float32 -> (B, C, T, F) float32 (PCEN forward)."""
    B, C, F, T = x.shape
    M = B * C * F
    n = T
    s = float((math.sqrt(1.0 + 4.0 * t_val ** 2) - 1.0) / (2.0 * t_val ** 2))

    # Smoothing matrix V exactly as the PyTorch module builds it; kernel uses V^T.
    p = (1.0 - s) ** jnp.arange(n + 1, dtype=jnp.float32)         # (n+1,)
    v = jnp.triu(jnp.tile(p, (n,)).reshape(n + 1, n)[:-1])         # (T, T)
    vt = v.T                                                       # (T, T)

    x_flat = x.reshape(M, T).astype(jnp.float32)                   # free reshape

    # Hoist parameter transcendentals (exp, pow) out of the kernel.
    alpha = jnp.exp(log_alpha.astype(jnp.float32).reshape(F))
    delta = jnp.exp(log_delta.astype(jnp.float32).reshape(F))
    r = jnp.exp(log_r.astype(jnp.float32).reshape(F))
    reps = B * C
    alpha_m = jnp.tile(alpha, reps).reshape(1, M)
    delta_m = jnp.tile(delta, reps).reshape(1, M)
    r_m = jnp.tile(r, reps).reshape(1, M)
    dr_m = jnp.tile(delta ** r, reps).reshape(1, M)

    blk_t = _pick_blk_t(T)
    blk_m = _pick_blk_m(M, T)
    n_t = T // blk_t
    n_m = pl.cdiv(M, blk_m)

    kernel = functools.partial(_pcen_kernel, s=s, eps=float(eps),
                               blk_t=blk_t, t_full=T)

    cost = pl.CostEstimate(
        flops=2 * M * T * T + 8 * M * T,
        transcendentals=4 * M * T,
        bytes_accessed=4 * (2 * M * T + T * T + 4 * M),
    )

    vmem_need = 4 * (2 * blk_m * T + 2 * blk_t * T + 2 * blk_t * blk_m + 8 * blk_m)
    vmem_limit = int(min(64 * 1024 * 1024, max(32 * 1024 * 1024, 2 * vmem_need)))

    out_tm = pl.pallas_call(
        kernel,
        out_shape=jax.ShapeDtypeStruct((T, M), jnp.float32),
        grid_spec=pltpu.PrefetchScalarGridSpec(
            num_scalar_prefetch=0,
            grid=(n_m, n_t),
            in_specs=[
                pl.BlockSpec((blk_m, T), lambda im, it: (im, 0)),   # x slab (full T)
                pl.BlockSpec((blk_t, T), lambda im, it: (it, 0)),   # V^T rows
                pl.BlockSpec((1, blk_m), lambda im, it: (0, im)),   # alpha
                pl.BlockSpec((1, blk_m), lambda im, it: (0, im)),   # delta
                pl.BlockSpec((1, blk_m), lambda im, it: (0, im)),   # r
                pl.BlockSpec((1, blk_m), lambda im, it: (0, im)),   # delta**r
            ],
            out_specs=pl.BlockSpec((blk_t, blk_m), lambda im, it: (it, im)),
        ),
        compiler_params=pltpu.CompilerParams(
            dimension_semantics=("parallel", "parallel"),
            vmem_limit_bytes=vmem_limit,
        ),
        cost_estimate=cost,
    )(x_flat, vt, alpha_m, delta_m, r_m, dr_m)

    # (T, M) == (T, B*C, F) -> (B*C, T, F) (contiguous-row copy) -> (B, C, T, F)
    return out_tm.reshape(T, B * C, F).transpose(1, 0, 2).reshape(B, C, T, F)


def pcen_reference(x, log_alpha, log_delta, log_r, *, t_val=2.0 ** 8, eps=1e-5):
    """Pure-JAX reference mirroring the PyTorch forward, for verification."""
    B, C, F, T = x.shape
    n = T
    s = (math.sqrt(1.0 + 4.0 * t_val ** 2) - 1.0) / (2.0 * t_val ** 2)
    alpha = jnp.exp(log_alpha)[:, None]
    delta = jnp.exp(log_delta)[:, None]
    r = jnp.exp(log_r)[:, None]
    p = (1.0 - s) ** jnp.arange(n + 1, dtype=jnp.float32)
    v = jnp.triu(jnp.tile(p, (n,)).reshape(n + 1, n)[:-1])
    smoother = s * (x @ v) + (1.0 - s) * (x[..., 0:1] @ v[None, 0])
    smooth = jnp.exp(-alpha * (jnp.log(eps) + jnp.log1p(smoother / eps)))
    pcen_ = (x * smooth + delta) ** r - delta ** r
    return pcen_.transpose(0, 1, 3, 2)


if __name__ == "__main__":
    # Small shapes consistent with the module: B=2, C=4, n_bands(F)=16, T=16.
    B, C, F, T = 2, 4, 16, 16
    key = jax.random.PRNGKey(0)
    (kx,) = jax.random.split(key, 1)

    # Spectrogram-like non-negative energies.
    x = jax.random.uniform(kx, (B, C, F, T), dtype=jnp.float32, minval=0.0, maxval=5.0)

    # Deterministic parameter init matching the module's __init__ (log-space params).
    log_alpha = jnp.full((F,), math.log(0.8), dtype=jnp.float32)
    log_delta = jnp.full((F,), math.log(10.0), dtype=jnp.float32)
    log_r = jnp.full((F,), math.log(0.25), dtype=jnp.float32)

    out = pcen_forward(x, log_alpha, log_delta, log_r)
    out = jax.block_until_ready(out)

    ref = pcen_reference(x, log_alpha, log_delta, log_r)
    assert out.shape == (B, C, T, F), out.shape
    max_err = float(jnp.max(jnp.abs(out - ref)))
    assert jnp.allclose(out, ref, atol=3e-5, rtol=1e-4), max_err

    print("KERNEL_OK")
</pallas_src>

<mosaic_0001>
module attributes {stable_mosaic.version = 11 : i64} {
  func.func @_pcen_kernel(%arg0: i32, %arg1: i32, %arg2: memref<128x16xf32, #tpu.memory_space<vmem>>, %arg3: memref<16x16xf32, #tpu.memory_space<vmem>>, %arg4: memref<1x128xf32, #tpu.memory_space<vmem>>, %arg5: memref<1x128xf32, #tpu.memory_space<vmem>>, %arg6: memref<1x128xf32, #tpu.memory_space<vmem>>, %arg7: memref<1x128xf32, #tpu.memory_space<vmem>>, %arg8: memref<16x128xf32, #tpu.memory_space<vmem>>) attributes {dimension_semantics = [#tpu.dimension_semantics<parallel>, #tpu.dimension_semantics<parallel>], iteration_bounds = array<i64: 1, 1>, scalar_prefetch = 0 : i64, scratch_operands = 0 : i64, tpu.core_type = #tpu.core_type<tc>, window_params = [{transform_indices = @transform_0, window_bounds = array<i64: 128, 16>}, {transform_indices = @transform_1, window_bounds = array<i64: 16, 16>}, {transform_indices = @transform_2, window_bounds = array<i64: 1, 128>}, {transform_indices = @transform_3, window_bounds = array<i64: 1, 128>}, {transform_indices = @transform_4, window_bounds = array<i64: 1, 128>}, {transform_indices = @transform_5, window_bounds = array<i64: 1, 128>}, {transform_indices = @transform_6, window_bounds = array<i64: 16, 128>}]} {
    %c0 = arith.constant 0 : index
    %c0_0 = arith.constant 0 : index
    %0 = vector.load %arg2[%c0, %c0_0] : memref<128x16xf32, #tpu.memory_space<vmem>>, vector<128x16xf32>
    %1 = tpu.transpose %0, [1, 0] : vector<128x16xf32> -> vector<16x128xf32>
    %c0_1 = arith.constant 0 : index
    %c0_2 = arith.constant 0 : index
    %2 = vector.load %arg3[%c0_1, %c0_2] : memref<16x16xf32, #tpu.memory_space<vmem>>, vector<16x16xf32>
    %cst = arith.constant dense<0.000000e+00> : vector<16x128xf32>
    %3 = tpu.matmul %2, %1, %cst {dimension_numbers = #tpu.dot_dimension_numbers<[1], [0], [0], [1], [0, 0, 1, 1], [], []>} : vector<16x16xf32>, vector<16x128xf32>, vector<16x128xf32> -> vector<16x128xf32>
    %cst_3 = arith.constant 0.00389862806 : f32
    %4 = vector.broadcast %cst_3 : f32 to vector<16x128xf32>
    %5 = arith.mulf %4, %3 : vector<16x128xf32>
    %6 = vector.extract_strided_slice %2 {offsets = [0, 0], sizes = [16, 1], strides = [1, 1]} : vector<16x16xf32> to vector<16x1xf32>
    %cst_4 = arith.constant 0.996101379 : f32
    %7 = vector.broadcast %cst_4 : f32 to vector<16x1xf32>
    %8 = arith.mulf %7, %6 : vector<16x1xf32>
    %9 = vector.extract_strided_slice %1 {offsets = [0, 0], sizes = [1, 128], strides = [1, 1]} : vector<16x128xf32> to vector<1x128xf32>
    %10 = vector.broadcast %8 : vector<16x1xf32> to vector<16x128xf32>
    %11 = vector.broadcast %9 : vector<1x128xf32> to vector<16x128xf32>
    %12 = arith.mulf %10, %11 : vector<16x128xf32>
    %13 = arith.addf %5, %12 : vector<16x128xf32>
    %c0_5 = arith.constant 0 : index
    %c0_6 = arith.constant 0 : index
    %14 = vector.load %arg4[%c0_5, %c0_6] : memref<1x128xf32, #tpu.memory_space<vmem>>, vector<1x128xf32>
    %cst_7 = arith.constant 0.000000e+00 : f32
    %15 = vector.broadcast %cst_7 : f32 to vector<1x128xf32>
    %16 = arith.subf %15, %14 : vector<1x128xf32>
    %cst_8 = arith.constant 9.99999974E-6 : f32
    %17 = vector.broadcast %cst_8 : f32 to vector<16x128xf32>
    %18 = arith.addf %17, %13 : vector<16x128xf32>
    %19 = math.log %18 : vector<16x128xf32>
    %20 = vector.broadcast %16 : vector<1x128xf32> to vector<16x128xf32>
    %21 = arith.mulf %20, %19 : vector<16x128xf32>
    %22 = math.exp %21 : vector<16x128xf32>
    %23 = arith.mulf %1, %22 : vector<16x128xf32>
    %c0_9 = arith.constant 0 : index
    %c0_10 = arith.constant 0 : index
    %24 = vector.load %arg5[%c0_9, %c0_10] : memref<1x128xf32, #tpu.memory_space<vmem>>, vector<1x128xf32>
    %25 = vector.broadcast %24 : vector<1x128xf32> to vector<16x128xf32>
    %26 = arith.addf %23, %25 : vector<16x128xf32>
    %c0_11 = arith.constant 0 : index
    %c0_12 = arith.constant 0 : index
    %27 = vector.load %arg6[%c0_11, %c0_12] : memref<1x128xf32, #tpu.memory_space<vmem>>, vector<1x128xf32>
    %28 = vector.broadcast %27 : vector<1x128xf32> to vector<16x128xf32>
    %29 = math.powf %26, %28 : vector<16x128xf32>
    %c0_13 = arith.constant 0 : index
    %c0_14 = arith.constant 0 : index
    %30 = vector.load %arg7[%c0_13, %c0_14] : memref<1x128xf32, #tpu.memory_space<vmem>>, vector<1x128xf32>
    %31 = vector.broadcast %30 : vector<1x128xf32> to vector<16x128xf32>
    %32 = arith.subf %29, %31 : vector<16x128xf32>
    %c0_15 = arith.constant 0 : index
    %c0_16 = arith.constant 0 : index
    %33 = vector.load %arg8[%c0_15, %c0_16] : memref<16x128xf32, #tpu.memory_space<vmem>>, vector<16x128xf32>
    tpu.vector_store %arg8[%c0_15, %c0_16], %32 {strides = array<i32>} : memref<16x128xf32, #tpu.memory_space<vmem>>, vector<16x128xf32>,
    return
  }
  func.func @transform_0(%arg0: i32, %arg1: i32) -> (i32, i32) {
    %c0_i32 = arith.constant 0 : i32
    %c0_i32_0 = arith.constant 0 : i32
    return %arg0, %c0_i32 : i32, i32
  }
  func.func @transform_1(%arg0: i32, %arg1: i32) -> (i32, i32) {
    %c0_i32 = arith.constant 0 : i32
    %c0_i32_0 = arith.constant 0 : i32
    return %arg1, %c0_i32 : i32, i32
  }
  func.func @transform_2(%arg0: i32, %arg1: i32) -> (i32, i32) {
    %c0_i32 = arith.constant 0 : i32
    %c0_i32_0 = arith.constant 0 : i32
    return %c0_i32, %arg0 : i32, i32
  }
  func.func @transform_3(%arg0: i32, %arg1: i32) -> (i32, i32) {
    %c0_i32 = arith.constant 0 : i32
    %c0_i32_0 = arith.constant 0 : i32
    return %c0_i32, %arg0 : i32, i32
  }
  func.func @transform_4(%arg0: i32, %arg1: i32) -> (i32, i32) {
    %c0_i32 = arith.constant 0 : i32
    %c0_i32_0 = arith.constant 0 : i32
    return %c0_i32, %arg0 : i32, i32
  }
  func.func @transform_5(%arg0: i32, %arg1: i32) -> (i32, i32) {
    %c0_i32 = arith.constant 0 : i32
    %c0_i32_0 = arith.constant 0 : i32
    return %c0_i32, %arg0 : i32, i32
  }
  func.func @transform_6(%arg0: i32, %arg1: i32) -> (i32, i32) {
    %c0_i32 = arith.constant 0 : i32
    return %arg1, %arg0 : i32, i32
  }
}

</mosaic_0001>

<bundles_post_ra>
// kernel: tpu_custom_call.1
= control target key start
LH: loop header
LB: loop body
LE: loop exit
PB: predicated region body
PF: predicated region fallthrough
CT: control target
= control target key end

     0   :  { %v416_v2 = vmov 0   ;;  %s700_s0 = inlined_call_operand.vmem [shape: f32[128,16], index: 0, kind: input, shape index: {}]   ;;  %s701_s1 = inlined_call_operand.vmem [shape: f32[16,16], index: 1, kind: input, shape index: {}]   ;;  %s702_s2 = inlined_call_operand.vmem [shape: f32[1,128], index: 2, kind: input, shape index: {}]   ;;  %s703_s3 = inlined_call_operand.vmem [shape: f32[1,128], index: 3, kind: input, shape index: {}]   ;;  %s704_s4 = inlined_call_operand.vmem [shape: f32[1,128], index: 4, kind: input, shape index: {}]   ;;  %s705_s5 = inlined_call_operand.vmem [shape: f32[1,128], index: 5, kind: input, shape index: {}]   ;;  %s706_s6 = inlined_call_operand.hbm [shape: f32[16,128], index: 6, kind: output, shape index: {}]  }
   0x1   :  { %v24_v0 = vld [vmem:[%s700_s0] sm:$0xff]  ;;  %374 = vset.pattern.permute.xlu1 %v416_v2  ;;  %v73_v4 = vld [vmem:[%s701_s1 + $0x8] sm:$0xff]  ;;  %v26_v7 = vld [vmem:[%s700_s0 + $0x10] sm:$0xff] }
   0x2   :  { %v72_v1 = vld [vmem:[%s701_s1] sm:$0xff]  ;;  %40 = vxpose.xlu0.b32.start [1/16] (narrow) %v24_v0, 16  ;;  %v25_v5 = vld [vmem:[%s700_s0 + $0x8] sm:$0xff]  ;;  %v159_v6 = vmul.f32 0.9961014, %v73_v4 }
   0x3   :  { %v158_v3 = vmul.f32 0.9961014, %v72_v1 }
   0x5   :  { %162 = vperm.xlu1 %374, %v158_v3  }
   0x6   :  { %41 = vxpose.xlu0.b32.cont [2/16] (narrow) %v25_v5, 16 }
   0x9   :  { %167 = vperm.xlu1 %374, %v159_v6  }
   0xa   :  { %11 = vsyncpa [#allocation3], 0  ;;  %42 = vxpose.xlu0.b32.cont [3/16] (narrow) %v26_v7, 16  ;;  %vm74_vm0 = vcmask 130048   ;;  %v27_v8 = vld [vmem:[%s700_s0 + $0x18] sm:$0xff]  ;;  %v28_v9 = vld [vmem:[%s700_s0 + $0x20] sm:$0xff]  ;;  %v170_v24 = vlaneseq }
   0xb   :  { %258 = vmatprep.mubr.msk.f32.mxu0 %vm74_vm0, %v72_v1  ;;  %v29_v10 = vld [vmem:[%s700_s0 + $0x28] sm:$0xff]  ;;  %v30_v11 = vld [vmem:[%s700_s0 + $0x30] sm:$0xff]  ;;  %v31_v12 = vld [vmem:[%s700_s0 + $0x38] sm:$0xff]  ;;  %s418_s11 = smov [#allocation2]  }
   0xc   :  { %v32_v13 = vld [vmem:[%s700_s0 + $0x40] sm:$0xff]  ;;  %v33_v14 = vld [vmem:[%s700_s0 + $0x48] sm:$0xff]  ;;  %v34_v15 = vld [vmem:[%s700_s0 + $0x50] sm:$0xff]  ;;  %v171_v25 = vshrl.u32 %v170_v24, 7  ;;  %s234_s12 = sshll.u32 %s418_s11, 4  ;;  %s235_s12 = int_to_ptr.vmem [resolvable:$true] %s234_s12 }
   0xd   :  { %v35_v16 = vld [vmem:[%s700_s0 + $0x58] sm:$0xff]  ;;  %v36_v17 = vld [vmem:[%s700_s0 + $0x60] sm:$0xff]  ;;  %v37_v18 = vld [vmem:[%s700_s0 + $0x68] sm:$0xff]  ;;  %p397_p1 = scmp.lt.s32.totalorder %s235_s12, %s235_s12 }
   0xe   :  { %43 = vxpose.xlu0.b32.cont [4/16] (narrow) %v27_v8, 16  ;;  %v38_v19 = vld [vmem:[%s700_s0 + $0x70] sm:$0xff]  ;;  %v39_v20 = vld [vmem:[%s700_s0 + $0x78] sm:$0xff]  ;;  %v172_v27 = vsub.s32 0, %v171_v25  ;;  %v178_v40 = vld [vmem:[%s702_s2] sm:$0x1] }
   0xf   :  { %v179_v41 = vsub.f32 0.0, %v178_v40  ;;  %v520_v51 = vld [vmem:[%s704_s4] ss:$0 sm:$0xff] }
  0x10   :  { %v247_v53 = vld [vmem:[%s703_s3] ss:$0 sm:$0xff]  ;;  %v526_v57 = vand.u32 2147483647, %v520_v51  ;;  %v274_v63 = vtrunc.f32 %v520_v51  ;;  %vm273_vm6 = vcmp.lt.f32.partialorder %v520_v51, 0 }
  0x11   :  { %v190_v42 = vrot.slane %v179_v41, %v172_v27 }
  0x12   :  { %44 = vxpose.xlu0.b32.cont [5/16] (narrow) %v28_v9, 16  ;;  %v278_v62 = vtrunc.f32 %v526_v57  ;;  %vm707_vm1 = vcmp.eq.f32.partialorder %v526_v57, 2139095040  ;;  %vm275_vm2 = vcmp.ne.f32.partialorder %v520_v51, %v274_v63  ;;  %vm277_vm7 = vcmp.lt.f32.partialorder %v526_v57, 1266679808 }
  0x13   :  { %vm546_vm3 = vmor %vm275_vm2, %vm707_vm1  ;;  %v417_v9 = vmov 2139095040  }
  0x14   :  { %v279_v0 = vcvt.f32.s32 %v278_v62  ;;  %vm282_vm5 = vmneg %vm546_vm3 }
  0x16   :  { %45 = vxpose.xlu0.b32.cont [6/16] (narrow) %v29_v10, 16  ;;  %v280_v1 = vand.u32 1, %v279_v0  ;;  %v305_v10 = vsel %vm273_vm6, 0, %v417_v9 }
  0x18   :  { %vm281_vm4 = vcmp.eq.s32.totalorder %v280_v1, 1 }
  0x19   :  { %vm283_vm8 = vmand %vm281_vm4, %vm282_vm5 }
  0x1a   :  { %46 = vxpose.xlu0.b32.cont [7/16] (narrow) %v30_v11, 16  ;;  %vm558_vm11 = vmand %vm277_vm7, %vm283_vm8 }
  0x1e   :  { %47 = vxpose.xlu0.b32.cont [8/16] (narrow) %v31_v12, 16 }
  0x22   :  { %48 = vxpose.xlu0.b32.cont [9/16] (narrow) %v32_v13, 16 }
  0x26   :  { %49 = vxpose.xlu0.b32.cont [10/16] (narrow) %v33_v14, 16  ;;  %v306_v14 = vxor.u32 2147483648, %v305_v10 }
  0x2a   :  { %50 = vxpose.xlu0.b32.cont [11/16] (narrow) %v34_v15, 16 }
  0x2e   :  { %51 = vxpose.xlu0.b32.cont [12/16] (narrow) %v35_v16, 16  ;;  %v293_v16 = vsel %vm273_vm6, 2139095040, %v416_v2 }
  0x32   :  { %52 = vxpose.xlu0.b32.cont [13/16] (narrow) %v36_v17, 16 }
  0x36   :  { %53 = vxpose.xlu0.b32.cont [14/16] (narrow) %v37_v18, 16 }
  0x3a   :  { %54 = vxpose.xlu0.b32.cont [15/16] (narrow) %v38_v19, 16  ;;  %v307_v19 = vsel %vm558_vm11, %v306_v14, %v305_v10 }
  0x3e   :  { %55 = vxpose.xlu0.b32.end [16/16] (narrow) %v39_v20, 16 }
  0x67   :  { %375 = vset.pattern.permute.xlu0 %v416_v2 }
  0x82   :  { %v56_v21 = vpop.trf.xlu0 }
  0x83   :  { %v173_v28 = vrot.slane %v56_v21, %v172_v27 }
  0x84   :  { %v163_v26 = vpop.permute.xlu1 %162 }
  0x85   :  { %v174_v34 = vmul.f32 %v173_v28, %v163_v26 }
  0x86   :  { %v57_v22 = vpop.trf.xlu0 }
  0x87   :  { %v261_v23 = vpack.c.bf16 %v57_v22, %v56_v21 }
  0x88   :  { %v168_v29 = vpop.permute.xlu1 %167 }
  0x89   :  { %262 = vmatprep.subr.bf16.mxu0 %v261_v23  ;;  %v175_v31 = vmul.f32 %v173_v28, %v168_v29 }
  0x8a   :  { %264 = vmatpush3.bf16.msra.mxu0 %v261_v23 }
  0x8d   :  { %259 = vmatmul.mubr.msk.f32.vlgmr.msra.gmra.mrb[0].mxu0 %vm74_vm0, %v73_v4 }
 0x160   :  { %v260_v30 = vpop.f32.mrb[0].mxu0 }
 0x161   :  { %v157_v32 = vmul.f32 0.003898628, %v260_v30  ;;  %v147_v33 = vpop.f32.mrb[1].mxu0 }
 0x162   :  { %v156_v35 = vmul.f32 0.003898628, %v147_v33 }
 0x163   :  { %v177_v36 = vadd.f32 %v175_v31, %v157_v32 }
 0x164   :  { %v176_v37 = vadd.f32 %v174_v34, %v156_v35 }
 0x165   :  { %v181_v38 = vadd.f32 1e-05, %v177_v36 }
 0x166   :  { %v180_v39 = vadd.f32 1e-05, %v176_v37 }
 0x167   :  { %376 = vlog2.f32 %v181_v38 }
 0x168   :  { %378 = vlog2.f32 %v180_v39  ;;  %v249_v39 = vld [vmem:[%s705_s5] ss:$0 sm:$0xff]  ;;  %s392_s5 = scalar_lea.vmem %s235_s12, 256 }
 0x169   :  { %p393_p0 = scmp.ne.s32.totalorder %s235_s12, %s392_s5  ;;  %p398_p2 = scmp.lt.s32.totalorder %s392_s5, %s392_s5 }
 0x16b   :  { %p399_p3 = por %p398_p2, %p397_p1 }
 0x16d   :  { %p400_p4 = pnand %p399_p3, %p393_p0 }
 0x171   :  { %v377_v43 = vpop.eup %376 }
 0x172   :  { %v379_v44 = vpop.eup %378  ;;  %v185_v45 = vmul.f32 0.6931472, %v377_v43 }
 0x173   :  { %v183_v46 = vmul.f32 0.6931472, %v379_v44 }
 0x174   :  { %v193_v47 = vmul.f32 %v190_v42, %v185_v45 }
 0x175   :  { %v192_v48 = vmul.f32 %v190_v42, %v183_v46 }
 0x176   :  { %v196_v49 = vmul.f32 1.442695, %v193_v47 }
 0x177   :  { %v194_v50 = vmul.f32 1.442695, %v192_v48 }
 0x178   :  { %380 = vpow2.f32 %v196_v49 }
 0x179   :  { %382 = vpow2.f32 %v194_v50 }
 0x182   :  { %v381_v52 = vpop.eup %380 }
 0x183   :  { %v383_v54 = vpop.eup %382  ;;  %v199_v55 = vmul.f32 %v381_v52, %v57_v22 }
 0x184   :  { %v198_v56 = vmul.f32 %v383_v54, %v56_v21 }
 0x185   :  { %v528_v58 = vadd.f32 %v247_v53, %v199_v55 }
 0x186   :  { %v530_v59 = vadd.f32 %v247_v53, %v198_v56 }
 0x187   :  { %v533_v60 = vand.u32 2147483647, %v528_v58  ;;  %vm338_vm2 = vcmp.eq.f32.partialorder %v528_v58, 0  ;;  %vm337_vm7 = vcmp.lt.f32.partialorder %v528_v58, 0 }
 0x188   :  { %v536_v61 = vand.u32 2147483647, %v530_v59  ;;  %vm708_vm9 = vcmp.lt.f32.partialorder %v530_v59, 0  ;;  %vm286_vm12 = vcmp.eq.f32.partialorder %v530_v59, 0  ;;  %vm607_vm8 = vmand %vm273_vm6, %vm338_vm2  ;;  %v360_v36 = vsel %vm337_vm7, %v307_v19, %v305_v10 }
 0x189   :  { %vm569_vm13 = vmand %vm708_vm9, %vm546_vm3  ;;  %vm341_vm14 = vcmp.gt.f32.partialorder %v533_v60, 1065353216  ;;  %vm288_vm9 = vcmp.lt.s32.totalorder %v530_v59, 0 }
 0x18a   :  { %384 = vlog2.f32 %v536_v61  ;;  %vm289_vm10 = vcmp.gt.f32.partialorder %v536_v61, 1065353216  ;;  %vm584_vm0 = vmand %vm273_vm6, %vm286_vm12 }
 0x18b   :  { %386 = vlog2.f32 %v533_v60  ;;  %vm576_vm15 = vmxor %vm273_vm6, %vm289_vm10  ;;  %vm339_vm10 = vcmp.eq.f32.partialorder %v528_v58, 1065353216 }
 0x18c   :  { %vm591_vm4 = vmxor %vm273_vm6, %vm341_vm14  ;;  %vm272_vm6 = vcmp.eq.f32.partialorder %v520_v51, 1065353216 }
 0x18d   :  { %vm300_vm5 = vmor %vm584_vm0, %vm576_vm15  ;;  %vm302_vm15 = vcmp.eq.f32.partialorder %v530_v59, 3212836864  ;;  %vm723_vm0 = vcmp.lt.f32.partialorder %v530_v59, 0 }
 0x18e   :  { %vm352_vm1 = vmor %vm607_vm8, %vm591_vm4  ;;  %v301_v23 = vsel %vm300_vm5, 2139095040, %v416_v2  ;;  %vm340_vm4 = vcmp.lt.s32.totalorder %v528_v58, 0  ;;  %v308_v28 = vsel %vm723_vm0, %v307_v19, %v305_v10  ;;  %vm290_vm8 = vcmp.eq.f32.partialorder %v536_v61, 2139095040 }
 0x18f   :  { %vm343_vm14 = vmand %vm337_vm7, %vm546_vm3  ;;  %v353_v27 = vsel %vm352_vm1, 2139095040, %v416_v2  ;;  %vm287_vm3 = vcmp.eq.f32.partialorder %v530_v59, 1065353216  ;;  %v303_v31 = vsel %vm302_vm15, 1065353216, %v301_v23  ;;  %vm362_vm1 = vcmp.ne.f32.partialorder %v528_v58, %v528_v58 }
 0x190   :  { %vm347_vm5 = vmand %vm340_vm4, %vm558_vm11  ;;  %vm342_vm15 = vcmp.eq.f32.partialorder %v533_v60, 2139095040 }
 0x194   :  { %v385_v4 = vpop.eup %384 }
 0x195   :  { %v387_v5 = vpop.eup %386  ;;  %v267_v6 = vmul.f32 %v385_v4, %v520_v51 }
 0x196   :  { %v319_v7 = vmul.f32 %v387_v5, %v520_v51 }
 0x197   :  { %388 = vpow2.f32 %v267_v6 }
 0x198   :  { %390 = vpow2.f32 %v319_v7 }
 0x1a1   :  { %v389_v18 = vpop.eup %388 }
 0x1a2   :  { %v391_v20 = vpop.eup %390  ;;  %v292_v21 = vsel %vm569_vm13, 2143289344, %v389_v18  ;;  %vm310_vm13 = vcmp.ne.f32.partialorder %v530_v59, %v530_v59 }
 0x1a3   :  { %v294_v22 = vsel %vm286_vm12, %v293_v16, %v292_v21  ;;  %v344_v24 = vsel %vm343_vm14, 2143289344, %v391_v20  ;;  %vm295_vm12 = vmand %vm288_vm9, %vm558_vm11  ;;  %vm724_vm9 = vcmp.eq.f32.partialorder %v526_v57, 2139095040  ;;  %vm725_vm14 = vcmp.ne.f32.partialorder %v520_v51, %v520_v51 }
 0x1a4   :  { %v296_v25 = vxor.u32 2147483648, %v294_v22  ;;  %v346_v26 = vsel %vm338_vm2, %v293_v16, %v344_v24  ;;  %vm354_vm2 = vcmp.eq.f32.partialorder %v528_v58, 3212836864  ;;  %vm726_vm11 = vcmp.eq.f32.partialorder %v520_v51, 0  ;;  %vm727_vm0 = vmmov %vm724_vm9 }
 0x1a5   :  { %v348_v29 = vxor.u32 2147483648, %v346_v26  ;;  %v355_v33 = vsel %vm354_vm2, 1065353216, %v353_v27  ;;  %vm314_vm4 = vmor %vm287_vm3, %vm726_vm11 }
 0x1a6   :  { %v297_v30 = vsel %vm295_vm12, %v296_v25, %v294_v22  ;;  %vm312_vm12 = vmor %vm310_vm13, %vm725_vm14 }
 0x1a7   :  { %v304_v2 = vsel %vm724_vm9, %v303_v31, %v297_v30  ;;  %v349_v32 = vsel %vm347_vm5, %v348_v29, %v346_v26  ;;  %vm728_vm13 = vmmov %vm725_vm14 }
 0x1a8   :  { %v309_v34 = vsel %vm290_vm8, %v308_v28, %v304_v2  ;;  %v356_v35 = vsel %vm727_vm0, %v355_v33, %v349_v32  ;;  %vm364_vm5 = vmor %vm362_vm1, %vm728_vm13 }
 0x1a9   :  { %v313_v37 = vsel %vm312_vm12, 2143289344, %v309_v34  ;;  %v361_v38 = vsel %vm342_vm15, %v360_v36, %v356_v35  ;;  %vm729_vm3 = vmmov %vm726_vm11 }
 0x1aa   :  { %v315_v40 = vsel %vm314_vm4, 1065353216, %v313_v37  ;;  %v365_v41 = vsel %vm364_vm5, 2143289344, %v361_v38  ;;  %vm366_vm2 = vmor %vm339_vm10, %vm729_vm3 }
 0x1ab   :  { %v316_v42 = vsel %vm272_vm6, %v530_v59, %v315_v40  ;;  %v367_v43 = vsel %vm366_vm2, 1065353216, %v365_v41 }
 0x1ac   :  { %v368_v44 = vsel %vm272_vm6, %v528_v58, %v367_v43  ;;  %v225_v45 = vsub.f32 %v316_v42, %v249_v39 }
 0x1ad   :  { %v226_v46 = vsub.f32 %v368_v44, %v249_v39 }
 0x1ae   :  { %227 = vst [vmem:[#allocation2] sm:$0xff] %v225_v45 }
 0x1af   :  { %228 = vst [vmem:[#allocation2 + $0x8] sm:$0xff] %v226_v46 }
 0x1b0   :  { %403 = shalt.err (!%p400_p4)
}
 0x1b1   :  { %s404_s15 = scalar_lea.hbm %s706_s6, 256 }
 0x1b2   :  { %p405_p5 = scmp.ne.s32.totalorder %s706_s6, %s404_s15  ;;  %p408_p6 = scmp.lt.u32.totalorder %s404_s15, %s706_s6 }
 0x1b4   :  { %p410_p7 = pnand %p408_p6, %p405_p5 }
 0x1b6   :  { %413 = shalt.err (!%p410_p7)
}
 0x1b7   :  { %s419_s20 = smov 128   ;;  %s420_s21 = smov 8  }
 0x1b8   :  { %240 = dma.vmem_to_hbm [thread:$0]  %s235_s12, 256, %s706_s6, [#allocation3], %s419_s20, %s419_s20, %s420_s21  }
 0x1b9   :  { %414 = dma.done.wait [#allocation3], 256  }
 0x1ba   :  { %415 = vsyncadd [#allocation3], 4294967040 }
 0x1bb   :  { %244 = vsyncpa [#allocation3], 1 }

</bundles_post_ra>
